<compile_context>
chip_gen: v7x
topology: tpu7x:2x2x1
jax: 0.10.0
libtpu: 0.0.40
codegen_flags: <defaults>
</compile_context>

<pallas_src>
import functools

import jax
import jax.numpy as jnp
from jax.experimental import pallas as pl
from jax.experimental.pallas import tpu as pltpu


def deepfm_kernel(*refs, num_deep_layers):
    """Transposed DeepFM tile kernel.

    refs = (xT, lin_row, poolT, [wT_i, b_i]*L, wd_col, head_smem, out).
      xT      : (F*D, TB) bf16   gathered embeddings, features x batch
      lin_row : (1,  TB)  f32    pre-reduced first-order term
      poolT   : (D, F*D)  bf16   stacked DxD identities (FM field pooling)
      wT_i    : (H_i, H_{i-1}) bf16 ; b_i : (H_i, 1) f32
      wd_col  : (H_L, 1)  f32    deep part of the final layer weight
      head    : (3,) f32 in SMEM = [w_linear, w_second, final_bias]
      out     : (1, TB) f32
    """
    x_ref, lin_ref, pool_ref = refs[:3]
    layer_refs = refs[3:3 + 2 * num_deep_layers]
    wd_ref, head_ref, out_ref = refs[3 + 2 * num_deep_layers:]

    x_bf = x_ref[...]                                   # (F*D, TB) bf16
    pool = pool_ref[...]                                # (D, F*D)  bf16

    # ---- FM second-order term on the MXU (field-sum via pooling matmul).
    # sum_e[d, b]  = sum_f x[f*D+d, b]
    # sum_sq[d, b] = sum_f x[f*D+d, b]^2   (bf16 products, f32 accumulation)
    sum_e = jnp.dot(pool, x_bf, preferred_element_type=jnp.float32)
    sum_sq = jnp.dot(pool, x_bf * x_bf, preferred_element_type=jnp.float32)
    second = 0.5 * jnp.sum(sum_e * sum_e - sum_sq, axis=0, keepdims=True)

    # ---- deep MLP, transposed: h = relu(W^T h + b), bf16 MXU / f32 acc.
    h = x_bf
    for li in range(num_deep_layers):
        w_ref = layer_refs[2 * li]
        b_ref = layer_refs[2 * li + 1]
        a = jnp.dot(w_ref[...], h,
                    preferred_element_type=jnp.float32) + b_ref[...]
        a = jnp.maximum(a, 0.0)                          # (H_i, TB) f32
        h = a.astype(jnp.bfloat16) if li + 1 < num_deep_layers else a

    # ---- final projection without a concat: deep part via VPU + sublane
    # reduce (lane-dense row result), scalar head weights from SMEM.
    deep_row = jnp.sum(h * wd_ref[...], axis=0, keepdims=True)   # (1, TB)

    w_lin = head_ref[0]
    w_sec = head_ref[1]
    bias = head_ref[2]

    logit = lin_ref[...] * w_lin + second * w_sec + deep_row + bias
    out_ref[...] = jax.nn.sigmoid(logit)                          # (1, TB)


def _pick_tb(batch, cap=4096):
    """Lane-dense batch tile: multiple of 128, large, >=2 tiles if possible."""
    b128 = 128 * pl.cdiv(batch, 128)
    if b128 >= 256:
        tb = 128 * pl.cdiv(b128 // 2, 128)   # at least two tiles (v7x 2 TCs)
    else:
        tb = b128
    return min(cap, tb)


def deepfm_forward(x_idx, params, *, tb=None):
    """x_idx: (B, F) int32 indices. Returns (B, 1) float32 probabilities."""
    B, F = x_idx.shape
    embeddings = params["embeddings"]
    D = embeddings[0].shape[1]

    num_layers = 0
    while f"w{num_layers + 1}" in params:
        num_layers += 1

    # ---- glue: gathers in XLA, presented transposed (features x batch).
    # TODO(synk): fuse these gathers into the kernel via scalar-prefetch of
    # x_idx + manual per-field DMA to avoid re-reading this stream from HBM.
    deep_in_t = jnp.concatenate(
        [embeddings[i][x_idx[:, i]].T for i in range(F)], axis=0)  # (F*D, B)
    lin_row = sum(params["linear"][i][x_idx[:, i]] for i in range(F)).T  # (1,B)

    # ---- batch tiling (lane dimension).
    if tb is None:
        tb = _pick_tb(B)
    else:
        tb = max(128, 128 * pl.cdiv(tb, 128))
    ntiles = pl.cdiv(B, tb)
    b_pad = tb * ntiles
    if b_pad != B:
        pad = b_pad - B
        deep_in_t = jnp.pad(deep_in_t, ((0, 0), (0, pad)))
        lin_row = jnp.pad(lin_row, ((0, 0), (0, pad)))

    # ---- operand preparation (bf16 MXU operands, f32 everything else).
    deep_in_t = deep_in_t.astype(jnp.bfloat16)                    # (F*D, B_pad)
    lin_row = lin_row.astype(jnp.float32)                          # (1, B_pad)
    pool_t = jnp.tile(jnp.eye(D, dtype=jnp.bfloat16), (1, F))      # (D, F*D)

    layer_args = []
    for li in range(num_layers):
        w = params[f"w{li + 1}"]                                   # (H_in, H_out)
        b = params[f"b{li + 1}"]                                   # (1, H_out)
        layer_args.append(w.T.astype(jnp.bfloat16))                # (H_out, H_in)
        layer_args.append(b.reshape(-1, 1).astype(jnp.float32))    # (H_out, 1)

    h_last = params[f"w{num_layers}"].shape[1]
    wf = params["wf"]                                              # (2+H_last, 1)
    wd_col = wf[2:, :].astype(jnp.float32)                         # (H_last, 1)
    head = jnp.concatenate(
        [wf[0], wf[1], params["bf"][0]]).astype(jnp.float32)       # (3,)

    # ---- BlockSpecs.
    def const_spec(shape):
        nd = len(shape)
        return pl.BlockSpec(shape, lambda i, _nd=nd: (0,) * _nd)

    x_spec = pl.BlockSpec((F * D, tb), lambda i: (0, i))
    lin_spec = pl.BlockSpec((1, tb), lambda i: (0, i))
    out_spec = pl.BlockSpec((1, tb), lambda i: (0, i))
    layer_specs = [const_spec(a.shape) for a in layer_args]
    head_spec = pl.BlockSpec(memory_space=pltpu.MemorySpace.SMEM)

    # ---- cost estimate (advisory, for XLA scheduling of the gather glue).
    dims = [F * D] + [params[f"w{i + 1}"].shape[1] for i in range(num_layers)]
    mlp_flops = sum(2 * a * b for a, b in zip(dims[:-1], dims[1:]))
    fm_flops = 2 * 2 * F * D * D + 6 * F * D
    flops = b_pad * (mlp_flops + fm_flops + 3 * dims[-1] + 8)
    bytes_accessed = (deep_in_t.size * 2 + lin_row.size * 4 + b_pad * 4
                      + pool_t.size * 2
                      + sum(int(a.size) * a.dtype.itemsize for a in layer_args)
                      + wd_col.size * 4 + head.size * 4)

    kernel = functools.partial(deepfm_kernel, num_deep_layers=num_layers)
    out = pl.pallas_call(
        kernel,
        out_shape=jax.ShapeDtypeStruct((1, b_pad), jnp.float32),
        grid=(ntiles,),
        in_specs=[x_spec, lin_spec, const_spec(pool_t.shape),
                  *layer_specs, const_spec(wd_col.shape), head_spec],
        out_specs=out_spec,
        compiler_params=pltpu.CompilerParams(
            dimension_semantics=("parallel",),
            vmem_limit_bytes=64 * 1024 * 1024),
        cost_estimate=pl.CostEstimate(
            flops=int(flops), transcendentals=int(b_pad),
            bytes_accessed=int(bytes_accessed)),
    )(deep_in_t, lin_row, pool_t, *layer_args, wd_col, head)

    return out[0, :B].reshape(B, 1)


def deepfm_reference(x_idx, params):
    """Pure-JAX f32 reference mirroring the PyTorch module."""
    B, F = x_idx.shape
    embeds = jnp.stack(
        [params["embeddings"][i][x_idx[:, i]] for i in range(F)], axis=1)
    linear_out = sum(params["linear"][i][x_idx[:, i]] for i in range(F))
    sum_e = jnp.sum(embeds, axis=1)
    second = 0.5 * jnp.sum(sum_e ** 2 - jnp.sum(embeds ** 2, axis=1),
                           axis=1, keepdims=True)
    h = embeds.reshape(B, -1)
    li = 1
    while f"w{li}" in params:
        h = jnp.maximum(h @ params[f"w{li}"] + params[f"b{li}"], 0.0)
        li += 1
    concat = jnp.concatenate([linear_out, second, h], axis=1)
    return jax.nn.sigmoid(concat @ params["wf"] + params["bf"])


def init_params(key, field_dims, embed_dim, deep_layers):
    """Deterministic synthetic parameter init (mirrors the module's shapes)."""
    F = len(field_dims)
    keys = jax.random.split(key, 2 * F + 2 * len(deep_layers) + 2)
    ki = iter(range(len(keys)))

    embeddings = [0.1 * jax.random.normal(keys[next(ki)], (fd, embed_dim),
                                          dtype=jnp.float32)
                  for fd in field_dims]
    linear = [0.1 * jax.random.normal(keys[next(ki)], (fd, 1),
                                      dtype=jnp.float32)
              for fd in field_dims]

    params = {"embeddings": embeddings, "linear": linear}

    in_dim = F * embed_dim
    dims = [in_dim] + list(deep_layers)
    for li in range(len(deep_layers)):
        fan_in, fan_out = dims[li], dims[li + 1]
        bound = 1.0 / (fan_in ** 0.5)
        params[f"w{li + 1}"] = jax.random.uniform(
            keys[next(ki)], (fan_in, fan_out),
            minval=-bound, maxval=bound, dtype=jnp.float32)
        params[f"b{li + 1}"] = jax.random.uniform(
            keys[next(ki)], (1, fan_out),
            minval=-bound, maxval=bound, dtype=jnp.float32)

    fin = 2 + deep_layers[-1]
    bound = 1.0 / (fin ** 0.5)
    params["wf"] = jax.random.uniform(keys[next(ki)], (fin, 1),
                                      minval=-bound, maxval=bound,
                                      dtype=jnp.float32)
    params["bf"] = jax.random.uniform(keys[next(ki)], (1, 1),
                                      minval=-bound, maxval=bound,
                                      dtype=jnp.float32)
    return params


if __name__ == "__main__":
    field_dims = [10, 20, 30, 15]
    embed_dim = 16
    deep_layers = [32, 16]

    key = jax.random.PRNGKey(0)
    pkey, xkey, xkey2 = jax.random.split(key, 3)
    params = init_params(pkey, field_dims, embed_dim, deep_layers)
    maxes = jnp.array(field_dims, dtype=jnp.int32)

    # Small smoke test: single batch tile.
    B = 8
    x = jax.random.randint(xkey, (B, len(field_dims)), 0, 10_000,
                           dtype=jnp.int32) % maxes
    out = jax.block_until_ready(deepfm_forward(x, params))
    ref = deepfm_reference(x, params)
    assert out.shape == (B, 1)
    assert bool(jnp.all((out >= 0.0) & (out <= 1.0)))
    assert bool(jnp.allclose(out, ref, atol=2e-2)), "mismatch vs f32 reference"

    # Multi-tile path: exercises the batch grid (>=2 tiles, v7x-friendly).
    B2 = 300
    x2 = jax.random.randint(xkey2, (B2, len(field_dims)), 0, 10_000,
                            dtype=jnp.int32) % maxes
    out2 = jax.block_until_ready(deepfm_forward(x2, params))
    ref2 = deepfm_reference(x2, params)
    assert out2.shape == (B2, 1)
    assert bool(jnp.allclose(out2, ref2, atol=2e-2)), "mismatch (multi-tile)"

    print("KERNEL_OK")
</pallas_src>

<mosaic_0001>
module attributes {stable_mosaic.version = 11 : i64} {
  func.func @deepfm_kernel(%arg0: i32, %arg1: memref<64x128xbf16, #tpu.memory_space<vmem>>, %arg2: memref<1x128xf32, #tpu.memory_space<vmem>>, %arg3: memref<16x64xbf16, #tpu.memory_space<vmem>>, %arg4: memref<32x64xbf16, #tpu.memory_space<vmem>>, %arg5: memref<32x1xf32, #tpu.memory_space<vmem>>, %arg6: memref<16x32xbf16, #tpu.memory_space<vmem>>, %arg7: memref<16x1xf32, #tpu.memory_space<vmem>>, %arg8: memref<16x1xf32, #tpu.memory_space<vmem>>, %arg9: memref<3xf32, #tpu.memory_space<smem>>, %arg10: memref<1x128xf32, #tpu.memory_space<vmem>>) attributes {dimension_semantics = [#tpu.dimension_semantics<parallel>], iteration_bounds = array<i64: 1>, scalar_prefetch = 0 : i64, scratch_operands = 0 : i64, tpu.core_type = #tpu.core_type<tc>, window_params = [{transform_indices = @transform_0, window_bounds = array<i64: 64, 128>}, {transform_indices = @transform_1, window_bounds = array<i64: 1, 128>}, {pipeline_mode = #tpu.pipeline_mode<synchronous>, transform_indices = @transform_2, window_bounds = array<i64: 16, 64>}, {pipeline_mode = #tpu.pipeline_mode<synchronous>, transform_indices = @transform_3, window_bounds = array<i64: 32, 64>}, {pipeline_mode = #tpu.pipeline_mode<synchronous>, transform_indices = @transform_4, window_bounds = array<i64: 32, 1>}, {pipeline_mode = #tpu.pipeline_mode<synchronous>, transform_indices = @transform_5, window_bounds = array<i64: 16, 32>}, {pipeline_mode = #tpu.pipeline_mode<synchronous>, transform_indices = @transform_6, window_bounds = array<i64: 16, 1>}, {pipeline_mode = #tpu.pipeline_mode<synchronous>, transform_indices = @transform_7, window_bounds = array<i64: 16, 1>}, {transform_indices = @transform_8, window_bounds = array<i64: 3>}, {transform_indices = @transform_9, window_bounds = array<i64: 1, 128>}]} {
    %c0 = arith.constant 0 : index
    %c0_0 = arith.constant 0 : index
    %0 = vector.load %arg1[%c0, %c0_0] : memref<64x128xbf16, #tpu.memory_space<vmem>>, vector<64x128xbf16>
    %c0_1 = arith.constant 0 : index
    %c0_2 = arith.constant 0 : index
    %1 = vector.load %arg3[%c0_1, %c0_2] : memref<16x64xbf16, #tpu.memory_space<vmem>>, vector<16x64xbf16>
    %cst = arith.constant dense<0.000000e+00> : vector<16x128xf32>
    %2 = tpu.matmul %1, %0, %cst {dimension_numbers = #tpu.dot_dimension_numbers<[1], [0], [0], [1], [0, 0, 1, 1], [], []>} : vector<16x64xbf16>, vector<64x128xbf16>, vector<16x128xf32> -> vector<16x128xf32>
    %3 = arith.mulf %0, %0 : vector<64x128xbf16>
    %cst_3 = arith.constant dense<0.000000e+00> : vector<16x128xf32>
    %4 = tpu.matmul %1, %3, %cst_3 {dimension_numbers = #tpu.dot_dimension_numbers<[1], [0], [0], [1], [0, 0, 1, 1], [], []>} : vector<16x64xbf16>, vector<64x128xbf16>, vector<16x128xf32> -> vector<16x128xf32>
    %5 = arith.mulf %2, %2 : vector<16x128xf32>
    %6 = arith.subf %5, %4 : vector<16x128xf32>
    %cst_4 = arith.constant dense<0.000000e+00> : vector<128xf32>
    %7 = vector.multi_reduction <add>, %6, %cst_4 [0] : vector<16x128xf32> to vector<128xf32>
    %8 = vector.shape_cast %7 : vector<128xf32> to vector<1x128xf32>
    %cst_5 = arith.constant 5.000000e-01 : f32
    %9 = vector.broadcast %cst_5 : f32 to vector<1x128xf32>
    %10 = arith.mulf %9, %8 : vector<1x128xf32>
    %c0_6 = arith.constant 0 : index
    %c0_7 = arith.constant 0 : index
    %11 = vector.load %arg4[%c0_6, %c0_7] : memref<32x64xbf16, #tpu.memory_space<vmem>>, vector<32x64xbf16>
    %cst_8 = arith.constant dense<0.000000e+00> : vector<32x128xf32>
    %12 = tpu.matmul %11, %0, %cst_8 {dimension_numbers = #tpu.dot_dimension_numbers<[1], [0], [0], [1], [0, 0, 1, 1], [], []>} : vector<32x64xbf16>, vector<64x128xbf16>, vector<32x128xf32> -> vector<32x128xf32>
    %c0_9 = arith.constant 0 : index
    %c0_10 = arith.constant 0 : index
    %13 = vector.load %arg5[%c0_9, %c0_10] : memref<32x1xf32, #tpu.memory_space<vmem>>, vector<32x1xf32>
    %14 = vector.broadcast %13 : vector<32x1xf32> to vector<32x128xf32>
    %15 = arith.addf %12, %14 : vector<32x128xf32>
    %cst_11 = arith.constant 0.000000e+00 : f32
    %16 = vector.broadcast %cst_11 : f32 to vector<32x128xf32>
    %17 = arith.maximumf %15, %16 : vector<32x128xf32>
    %18 = arith.truncf %17 : vector<32x128xf32> to vector<32x128xbf16>
    %c0_12 = arith.constant 0 : index
    %c0_13 = arith.constant 0 : index
    %19 = vector.load %arg6[%c0_12, %c0_13] : memref<16x32xbf16, #tpu.memory_space<vmem>>, vector<16x32xbf16>
    %cst_14 = arith.constant dense<0.000000e+00> : vector<16x128xf32>
    %20 = tpu.matmul %19, %18, %cst_14 {dimension_numbers = #tpu.dot_dimension_numbers<[1], [0], [0], [1], [0, 0, 1, 1], [], []>} : vector<16x32xbf16>, vector<32x128xbf16>, vector<16x128xf32> -> vector<16x128xf32>
    %c0_15 = arith.constant 0 : index
    %c0_16 = arith.constant 0 : index
    %21 = vector.load %arg7[%c0_15, %c0_16] : memref<16x1xf32, #tpu.memory_space<vmem>>, vector<16x1xf32>
    %22 = vector.broadcast %21 : vector<16x1xf32> to vector<16x128xf32>
    %23 = arith.addf %20, %22 : vector<16x128xf32>
    %cst_17 = arith.constant 0.000000e+00 : f32
    %24 = vector.broadcast %cst_17 : f32 to vector<16x128xf32>
    %25 = arith.maximumf %23, %24 : vector<16x128xf32>
    %c0_18 = arith.constant 0 : index
    %c0_19 = arith.constant 0 : index
    %26 = vector.load %arg8[%c0_18, %c0_19] : memref<16x1xf32, #tpu.memory_space<vmem>>, vector<16x1xf32>
    %27 = vector.broadcast %26 : vector<16x1xf32> to vector<16x128xf32>
    %28 = arith.mulf %25, %27 : vector<16x128xf32>
    %cst_20 = arith.constant dense<0.000000e+00> : vector<128xf32>
    %29 = vector.multi_reduction <add>, %28, %cst_20 [0] : vector<16x128xf32> to vector<128xf32>
    %30 = vector.shape_cast %29 : vector<128xf32> to vector<1x128xf32>
    %c0_21 = arith.constant 0 : index
    %31 = memref.load %arg9[%c0_21] : memref<3xf32, #tpu.memory_space<smem>>
    %c1 = arith.constant 1 : index
    %32 = memref.load %arg9[%c1] : memref<3xf32, #tpu.memory_space<smem>>
    %c2 = arith.constant 2 : index
    %33 = memref.load %arg9[%c2] : memref<3xf32, #tpu.memory_space<smem>>
    %c0_22 = arith.constant 0 : index
    %c0_23 = arith.constant 0 : index
    %34 = vector.load %arg2[%c0_22, %c0_23] : memref<1x128xf32, #tpu.memory_space<vmem>>, vector<1x128xf32>
    %35 = vector.broadcast %31 : f32 to vector<1x128xf32>
    %36 = arith.mulf %34, %35 : vector<1x128xf32>
    %37 = vector.broadcast %32 : f32 to vector<1x128xf32>
    %38 = arith.mulf %10, %37 : vector<1x128xf32>
    %39 = arith.addf %36, %38 : vector<1x128xf32>
    %40 = arith.addf %39, %30 : vector<1x128xf32>
    %41 = vector.broadcast %33 : f32 to vector<1x128xf32>
    %42 = arith.addf %40, %41 : vector<1x128xf32>
    %43 = arith.negf %42 : vector<1x128xf32>
    %44 = math.exp %43 : vector<1x128xf32>
    %cst_24 = arith.constant 1.000000e+00 : f32
    %45 = vector.broadcast %cst_24 : f32 to vector<1x128xf32>
    %46 = arith.addf %45, %44 : vector<1x128xf32>
    %47 = arith.divf %45, %46 : vector<1x128xf32>
    %c0_25 = arith.constant 0 : index
    %c0_26 = arith.constant 0 : index
    %48 = vector.load %arg10[%c0_25, %c0_26] : memref<1x128xf32, #tpu.memory_space<vmem>>, vector<1x128xf32>
    tpu.vector_store %arg10[%c0_25, %c0_26], %47 {strides = array<i32>} : memref<1x128xf32, #tpu.memory_space<vmem>>, vector<1x128xf32>,
    return
  }
  func.func @transform_0(%arg0: i32) -> (i32, i32) {
    %c0_i32 = arith.constant 0 : i32
    %c0_i32_0 = arith.constant 0 : i32
    return %c0_i32, %arg0 : i32, i32
  }
  func.func @transform_1(%arg0: i32) -> (i32, i32) {
    %c0_i32 = arith.constant 0 : i32
    %c0_i32_0 = arith.constant 0 : i32
    return %c0_i32, %arg0 : i32, i32
  }
  func.func @transform_2(%arg0: i32) -> (i32, i32) {
    %c0_i32 = arith.constant 0 : i32
    %c0_i32_0 = arith.constant 0 : i32
    %c0_i32_1 = arith.constant 0 : i32
    return %c0_i32, %c0_i32_0 : i32, i32
  }
  func.func @transform_3(%arg0: i32) -> (i32, i32) {
    %c0_i32 = arith.constant 0 : i32
    %c0_i32_0 = arith.constant 0 : i32
    %c0_i32_1 = arith.constant 0 : i32
    return %c0_i32, %c0_i32_0 : i32, i32
  }
  func.func @transform_4(%arg0: i32) -> (i32, i32) {
    %c0_i32 = arith.constant 0 : i32
    %c0_i32_0 = arith.constant 0 : i32
    %c0_i32_1 = arith.constant 0 : i32
    return %c0_i32, %c0_i32_0 : i32, i32
  }
  func.func @transform_5(%arg0: i32) -> (i32, i32) {
    %c0_i32 = arith.constant 0 : i32
    %c0_i32_0 = arith.constant 0 : i32
    %c0_i32_1 = arith.constant 0 : i32
    return %c0_i32, %c0_i32_0 : i32, i32
  }
  func.func @transform_6(%arg0: i32) -> (i32, i32) {
    %c0_i32 = arith.constant 0 : i32
    %c0_i32_0 = arith.constant 0 : i32
    %c0_i32_1 = arith.constant 0 : i32
    return %c0_i32, %c0_i32_0 : i32, i32
  }
  func.func @transform_7(%arg0: i32) -> (i32, i32) {
    %c0_i32 = arith.constant 0 : i32
    %c0_i32_0 = arith.constant 0 : i32
    %c0_i32_1 = arith.constant 0 : i32
    return %c0_i32, %c0_i32_0 : i32, i32
  }
  func.func @transform_8(%arg0: i32) -> i32 {
    %c0_i32 = arith.constant 0 : i32
    %c0_i32_0 = arith.constant 0 : i32
    return %c0_i32 : i32
  }
  func.func @transform_9(%arg0: i32) -> (i32, i32) {
    %c0_i32 = arith.constant 0 : i32
    %c0_i32_0 = arith.constant 0 : i32
    return %c0_i32, %arg0 : i32, i32
  }
}

</mosaic_0001>

<bundles_post_ra>
// kernel: tpu_custom_call.1
= control target key start
LH: loop header
LB: loop body
LE: loop exit
PB: predicated region body
PF: predicated region fallthrough
CT: control target
= control target key end

     0   :  { %14 = vsyncpa [#allocation3], 0  ;;  %s1117_s0 = inlined_call_operand.hbm [shape: bf16[64,128], index: 0, kind: input, shape index: {}]   ;;  %s1118_s1 = inlined_call_operand.hbm [shape: f32[1,128], index: 1, kind: input, shape index: {}]   ;;  %s1119_s2 = inlined_call_operand.hbm [shape: bf16[16,64], index: 2, kind: input, shape index: {}]   ;;  %s1120_s3 = inlined_call_operand.hbm [shape: bf16[32,64], index: 3, kind: input, shape index: {}]   ;;  %s1121_s4 = inlined_call_operand.hbm [shape: f32[32,1], index: 4, kind: input, shape index: {}]   ;;  %s1122_s5 = inlined_call_operand.hbm [shape: bf16[16,32], index: 5, kind: input, shape index: {}]   ;;  %s1123_s6 = inlined_call_operand.hbm [shape: f32[16,1], index: 6, kind: input, shape index: {}]   ;;  %s1124_s7 = inlined_call_operand.hbm [shape: f32[16,1], index: 7, kind: input, shape index: {}]   ;;  %s1125_s8 = inlined_call_operand.hbm [shape: f32[3], index: 8, kind: input, shape index: {}]   ;;  %s1126_s9 = inlined_call_operand.hbm [shape: f32[1,128], index: 9, kind: output, shape index: {}]  }
   0x1   :  { %15 = vsyncpa [#allocation7], 0 }
   0x2   :  { %16 = vsyncpa [#allocation10], 0 }
   0x3   :  { %17 = vsyncpa [#allocation13], 0 }
   0x4   :  { %18 = vsyncpa [#allocation16], 0 }
   0x5   :  { %19 = vsyncpa [#allocation5], 0 }
   0x6   :  { %20 = vsyncpa [#allocation4], 0  ;;  %s882_s30 = smov [#allocation6]   ;;  %s660_s13 = scalar_lea.hbm %s1118_s1, 16 }
   0x7   :  { %s39_s10 = sshll.u32 %s882_s30, 4  ;;  %p661_p0 = scmp.ne.s32.totalorder %s1118_s1, %s660_s13  ;;  %s40_s10 = int_to_ptr.vmem [resolvable:$true] %s39_s10 }
   0x8   :  { %p664_p1 = scmp.lt.u32.totalorder %s660_s13, %s1118_s1 }
   0xa   :  { %p666_p2 = pnand %p664_p1, %p661_p0 }
   0xc   :  { %669 = shalt.err (!%p666_p2)
}
   0xd   :  { %s670_s18 = scalar_lea.vmem %s40_s10, 16  ;;  %s674_s19 = scalar_lea.vmem %s40_s10, 32 }
   0xe   :  { %p671_p3 = scmp.ne.s32.totalorder %s40_s10, %s670_s18  ;;  %p675_p4 = scmp.lt.s32.totalorder %s40_s10, %s40_s10 }
   0xf   :  { %p676_p5 = scmp.lt.s32.totalorder %s674_s19, %s670_s18 }
  0x11   :  { %p677_p6 = por %p676_p5, %p675_p4 }
  0x13   :  { %p678_p7 = pnand %p677_p6, %p671_p3 }
  0x15   :  { %681 = shalt.err (!%p678_p7)
}
  0x16   :  { %42 = dma.hbm_to_vmem [thread:$0]  %s1118_s1, 16, %s40_s10, [#allocation7]  }
  0x17   :  { %s883_s22 = smov [#allocation9]   ;;  %s884_s24 = smov [#allocation12]  }
  0x18   :  { %s60_s23 = sshll.u32 %s883_s22, 4  ;;  %s84_s25 = sshll.u32 %s884_s24, 4  ;;  %s61_s23 = int_to_ptr.vmem [resolvable:$true] %s60_s23  ;;  %s85_s25 = int_to_ptr.vmem [resolvable:$true] %s84_s25 }
  0x19   :  { %s682_s28 = scalar_lea.hbm %s1120_s3, 256 }
  0x1a   :  { %p683_p8 = scmp.ne.s32.totalorder %s1120_s3, %s682_s28  ;;  %p686_p9 = scmp.lt.u32.totalorder %s682_s28, %s1120_s3 }
  0x1c   :  { %p688_p10 = pnand %p686_p9, %p683_p8 }
  0x1e   :  { %691 = shalt.err (!%p688_p10)
}
  0x1f   :  { %s692_s1 = scalar_lea.vmem %s61_s23, 256  ;;  %p697_p12 = scmp.lt.s32.totalorder %s61_s23, %s61_s23 }
  0x20   :  { %p693_p11 = scmp.ne.s32.totalorder %s61_s23, %s692_s1  ;;  %p698_p13 = scmp.lt.s32.totalorder %s692_s1, %s692_s1 }
  0x22   :  { %p699_p0 = por %p698_p13, %p697_p12 }
  0x24   :  { %p700_p1 = pnand %p699_p0, %p693_p11 }
  0x26   :  { %703 = shalt.err (!%p700_p1)
}
  0x27   :  { %s885_s10 = smov 64   ;;  %s886_s13 = smov 4  }
  0x28   :  { %66 = dma.hbm_to_vmem [thread:$0]  %s1120_s3, 256, %s61_s23, [#allocation10], %s885_s10, %s885_s10, %s886_s13  }
  0x29   :  { %s704_s18 = scalar_lea.hbm %s1122_s5, 128 }
  0x2a   :  { %p705_p2 = scmp.ne.s32.totalorder %s1122_s5, %s704_s18  ;;  %p708_p3 = scmp.lt.u32.totalorder %s704_s18, %s1122_s5 }
  0x2c   :  { %p710_p4 = pnand %p708_p3, %p705_p2 }
  0x2e   :  { %713 = shalt.err (!%p710_p4)
}
  0x2f   :  { %s714_s24 = scalar_lea.vmem %s85_s25, 128  ;;  %p719_p6 = scmp.lt.s32.totalorder %s85_s25, %s85_s25 }
  0x30   :  { %p715_p5 = scmp.ne.s32.totalorder %s85_s25, %s714_s24  ;;  %p720_p7 = scmp.lt.s32.totalorder %s714_s24, %s714_s24 }
  0x32   :  { %p721_p8 = por %p720_p7, %p719_p6 }
  0x34   :  { %p722_p9 = pnand %p721_p8, %p715_p5 }
  0x36   :  { %725 = shalt.err (!%p722_p9)
}
  0x37   :  { %90 = dma.hbm_to_vmem [thread:$0]  %s1122_s5, 128, %s85_s25, [#allocation13], %s885_s10, %s885_s10, %s886_s13  }
  0x38   :  { %s887_s26 = smov [#allocation2]   ;;  %s888_s28 = smov [#allocation8]  }
  0x39   :  { %s26_s27 = sshll.u32 %s887_s26, 4  ;;  %s48_s29 = sshll.u32 %s888_s28, 4  ;;  %s27_s27 = int_to_ptr.vmem [resolvable:$true] %s26_s27  ;;  %s49_s29 = int_to_ptr.vmem [resolvable:$true] %s48_s29 }
  0x3a   :  { %s726_s12 = scalar_lea.hbm %s1117_s0, 512 }
  0x3b   :  { %p727_p10 = scmp.ne.s32.totalorder %s1117_s0, %s726_s12  ;;  %p730_p11 = scmp.lt.u32.totalorder %s726_s12, %s1117_s0 }
  0x3d   :  { %p732_p12 = pnand %p730_p11, %p727_p10 }
  0x3f   :  { %735 = shalt.err (!%p732_p12)
}
  0x40   :  { %s736_s5 = scalar_lea.vmem %s27_s27, 512  ;;  %p741_p0 = scmp.lt.s32.totalorder %s27_s27, %s27_s27 }
  0x41   :  { %p737_p13 = scmp.ne.s32.totalorder %s27_s27, %s736_s5  ;;  %p742_p1 = scmp.lt.s32.totalorder %s736_s5, %s736_s5 }
  0x43   :  { %p743_p2 = por %p742_p1, %p741_p0 }
  0x45   :  { %p744_p3 = pnand %p743_p2, %p737_p13 }
  0x47   :  { %747 = shalt.err (!%p744_p3)
}
  0x48   :  { %32 = dma.hbm_to_vmem [thread:$0]  %s1117_s0, 512, %s27_s27, [#allocation3], %s885_s10, %s885_s10, %s886_s13  }
  0x49   :  { %s748_s20 = scalar_lea.hbm %s1119_s2, 128 }
  0x4a   :  { %p749_p4 = scmp.ne.s32.totalorder %s1119_s2, %s748_s20  ;;  %p752_p5 = scmp.lt.u32.totalorder %s748_s20, %s1119_s2 }
  0x4c   :  { %p754_p6 = pnand %p752_p5, %p749_p4 }
  0x4e   :  { %757 = shalt.err (!%p754_p6)
}
  0x4f   :  { %s758_s23 = scalar_lea.vmem %s49_s29, 128  ;;  %p763_p8 = scmp.lt.s32.totalorder %s49_s29, %s49_s29 }
  0x50   :  { %p759_p7 = scmp.ne.s32.totalorder %s49_s29, %s758_s23  ;;  %p764_p9 = scmp.lt.s32.totalorder %s758_s23, %s758_s23 }
  0x52   :  { %p765_p10 = por %p764_p9, %p763_p8 }
  0x54   :  { %p766_p11 = pnand %p765_p10, %p759_p7 }
  0x56   :  { %769 = shalt.err (!%p766_p11)
}
  0x57   :  { %54 = dma.hbm_to_vmem [thread:$0]  %s1119_s2, 128, %s49_s29, [#allocation7], %s885_s10, %s885_s10, %s886_s13  }
  0x58   :  { %s889_s27 = smov [#allocation11]   ;;  %s770_s12 = scalar_lea.hbm %s1121_s4, 512 }
  0x59   :  { %s72_s28 = sshll.u32 %s889_s27, 4  ;;  %p771_p12 = scmp.ne.s32.totalorder %s1121_s4, %s770_s12  ;;  %s73_s28 = int_to_ptr.vmem [resolvable:$true] %s72_s28 }
  0x5a   :  { %p774_p13 = scmp.lt.u32.totalorder %s770_s12, %s1121_s4 }
  0x5c   :  { %p776_p0 = pnand %p774_p13, %p771_p12 }
  0x5e   :  { %779 = shalt.err (!%p776_p0)
}
  0x5f   :  { %s780_s5 = scalar_lea.vmem %s73_s28, 512  ;;  %p785_p2 = scmp.lt.s32.totalorder %s73_s28, %s73_s28 }
  0x60   :  { %p781_p1 = scmp.ne.s32.totalorder %s73_s28, %s780_s5  ;;  %p786_p3 = scmp.lt.s32.totalorder %s780_s5, %s780_s5 }
  0x62   :  { %p787_p4 = por %p786_p3, %p785_p2 }
  0x64   :  { %p788_p5 = pnand %p787_p4, %p781_p1 }
  0x66   :  { %791 = shalt.err (!%p788_p5)
}
  0x67   :  { %s890_s2 = smov 128   ;;  %s891_s10 = smov 8  }
  0x68   :  { %78 = dma.hbm_to_vmem [thread:$0]  %s1121_s4, 512, %s73_s28, [#allocation10], %s890_s2, %s890_s2, %s891_s10  }
  0x69   :  { %s892_s25 = smov [#allocation14]   ;;  %s893_s18 = smov [#allocation15]  }
  0x6a   :  { %s96_s17 = sshll.u32 %s892_s25, 4  ;;  %s108_s19 = sshll.u32 %s893_s18, 4  ;;  %s97_s17 = int_to_ptr.vmem [resolvable:$true] %s96_s17  ;;  %s1036_s19 = int_to_ptr.vmem [resolvable:$true] %s108_s19 }
  0x6b   :  { %s792_s22 = scalar_lea.hbm %s1123_s6, 256 }
  0x6c   :  { %p793_p6 = scmp.ne.s32.totalorder %s1123_s6, %s792_s22  ;;  %p796_p7 = scmp.lt.u32.totalorder %s792_s22, %s1123_s6 }
  0x6e   :  { %p798_p8 = pnand %p796_p7, %p793_p6 }
  0x70   :  { %801 = shalt.err (!%p798_p8)
}
  0x71   :  { %s802_s4 = scalar_lea.vmem %s97_s17, 256  ;;  %p807_p10 = scmp.lt.s32.totalorder %s97_s17, %s97_s17 }
  0x72   :  { %p803_p9 = scmp.ne.s32.totalorder %s97_s17, %s802_s4  ;;  %p808_p11 = scmp.lt.s32.totalorder %s802_s4, %s802_s4 }
  0x74   :  { %p809_p12 = por %p808_p11, %p807_p10 }
  0x76   :  { %p810_p13 = pnand %p809_p12, %p803_p9 }
  0x78   :  { %813 = shalt.err (!%p810_p13)
}
  0x79   :  { %102 = dma.hbm_to_vmem [thread:$0]  %s1123_s6, 256, %s97_s17, [#allocation13], %s890_s2, %s890_s2, %s891_s10  }
  0x7a   :  { %s814_s11 = scalar_lea.hbm %s1124_s7, 256 }
  0x7b   :  { %p815_p0 = scmp.ne.s32.totalorder %s1124_s7, %s814_s11  ;;  %p818_p1 = scmp.lt.u32.totalorder %s814_s11, %s1124_s7 }
  0x7d   :  { %p820_p2 = pnand %p818_p1, %p815_p0 }
  0x7f   :  { %823 = shalt.err (!%p820_p2)
}
  0x80   :  { %s824_s16 = scalar_lea.vmem %s1036_s19, 256  ;;  %p829_p4 = scmp.lt.s32.totalorder %s1036_s19, %s1036_s19 }
  0x81   :  { %p825_p3 = scmp.ne.s32.totalorder %s1036_s19, %s824_s16  ;;  %p830_p5 = scmp.lt.s32.totalorder %s824_s16, %s824_s16 }
  0x83   :  { %p831_p6 = por %p830_p5, %p829_p4 }
  0x85   :  { %p832_p7 = pnand %p831_p6, %p825_p3 }
  0x87   :  { %835 = shalt.err (!%p832_p7)
}
  0x88   :  { %114 = dma.hbm_to_vmem [thread:$0]  %s1124_s7, 256, %s1036_s19, [#allocation16], %s890_s2, %s890_s2, %s891_s10  }
  0x89   :  { %s836_s25 = scalar_lea.hbm %s1125_s8, 16 }
  0x8a   :  { %p837_p8 = scmp.ne.s32.totalorder %s1125_s8, %s836_s25  ;;  %p840_p9 = scmp.lt.u32.totalorder %s836_s25, %s1125_s8 }
  0x8c   :  { %p842_p10 = pnand %p840_p9, %p837_p8 }
  0x8e   :  { %845 = shalt.err (!%p842_p10)
}
  0x8f   :  { %s894_s22 = smov [#allocation17]  }
  0x90   :  { %122 = dma.hbm_to_smem %s1125_s8, 16, %s894_s22, [#allocation5]  }
  0x91   :  { %868 = dma.done.wait [#allocation3], 512  }
  0x92   :  { %869 = vsyncadd [#allocation3], 4294966784 }
  0x93   :  { %870 = dma.done.wait [#allocation7], 144  }
  0x94   :  { %871 = vsyncadd [#allocation7], 4294967152 }
  0x95   :  { %872 = dma.done.wait [#allocation10], 768  }
  0x96   :  { %873 = vsyncadd [#allocation10], 4294966528 }
  0x97   :  { %874 = dma.done.wait [#allocation13], 384  }
  0x98   :  { %875 = vsyncadd [#allocation13], 4294966912 }
  0x99   :  { %876 = dma.done.wait [#allocation16], 256  }
  0x9a   :  { %877 = vsyncadd [#allocation16], 4294967040 }
  0x9b   :  { %878 = dma.done.wait [#allocation5], 16  }
  0x9c   :  { %879 = vsyncadd [#allocation5], 4294967280 }
  0x9d   :  { %150 = sfence }
  0x9e   :  { %v152_v0 = vld [vmem:[#allocation2] sm:$0xf]  ;;  %v153_v1 = vld [vmem:[#allocation2 + $0x4] sm:$0xf]  ;;  %v895_v2 = vmov 0.0   ;;  %vm896_vm0 = vmmov 0  }
  0x9f   :  { %585 = vmatprep.subr.bf16.mxu0 %v895_v2  ;;  %v547_v3 = vcombine.low %v152_v0, %v153_v1  ;;  %597 = vmatprep.subr.bf16.mxu1 %v895_v2  ;;  %v236_v4 = vmul.bf16 %v152_v0, %v152_v0  ;;  %v237_v5 = vmul.bf16 %v153_v1, %v153_v1  ;;  %v154_v6 = vld [vmem:[#allocation2 + $0x8] sm:$0xf]  ;;  %v155_v7 = vld [vmem:[#allocation2 + $0xc] sm:$0xf]  ;;  %v156_v10 = vld [vmem:[#allocation2 + $0x10] sm:$0xf] }
  0xa0   :  { %v238_v8 = vmul.bf16 %v154_v6, %v154_v6  ;;  %v239_v9 = vmul.bf16 %v155_v7, %v155_v7  ;;  %v157_v11 = vld [vmem:[#allocation2 + $0x14] sm:$0xf]  ;;  %593 = vmatprep.mubr.msk.bf16.mxu0 %vm896_vm0, %v895_v2  ;;  %v548_v13 = vcombine.low %v154_v6, %v155_v7  ;;  %v158_v14 = vld [vmem:[#allocation2 + $0x18] sm:$0xf]  ;;  %605 = vmatprep.mubr.msk.bf16.mxu1 %vm896_vm0, %v895_v2  ;;  %v159_v18 = vld [vmem:[#allocation2 + $0x1c] sm:$0xf] }
  0xa1   :  { %586 = vmatpush3.bf16.msra.mxu0 %v547_v3  ;;  %v552_v12 = vcombine.low %v236_v4, %v237_v5  ;;  %v240_v16 = vmul.bf16 %v156_v10, %v156_v10  ;;  %v241_v17 = vmul.bf16 %v157_v11, %v157_v11  ;;  %v897_v19 = vmov 0   ;;  %v325_v20 = vld [vmem:[#allocation11] sm:$0xff]  ;;  %v327_v21 = vld [vmem:[#allocation11 + $0x10] sm:$0xff]  ;;  %v326_v23 = vld [vmem:[#allocation11 + $0x8] sm:$0xff]  ;;  %s563_s7 = sld [smem:[#allocation17 + $0x1]]  ;;  %s507_s8 = sld [smem:[#allocation17]] }
  0xa2   :  { %587 = vmatprep.subr.bf16.mxu0 %v895_v2  ;;  %v553_v15 = vcombine.low %v238_v8, %v239_v9  ;;  %646 = vset.pattern.permute.xlu0 %v897_v19  ;;  %v549_v22 = vcombine.low %v156_v10, %v157_v11  ;;  %v242_v25 = vmul.bf16 %v158_v14, %v158_v14  ;;  %v328_v27 = vld [vmem:[#allocation11 + $0x18] sm:$0xff]  ;;  %v422_v29 = vld [vmem:[#allocation14] sm:$0xff]  ;;  %v423_v32 = vld [vmem:[#allocation14 + $0x8] sm:$0xff]  ;;  %vm191_vm1 = vcmask 523264   ;;  %s564_s2 = sld [smem:[#allocation17 + $0x2]]  ;;  %s898_s10 = smov [#allocation18]  }
  0xa3   :  { %598 = vmatpush3.bf16.msra.mxu1 %v552_v12  ;;  %331 = vperm.xlu0 %646, %v325_v20   ;;  %v554_v24 = vcombine.low %v240_v16, %v241_v17  ;;  %v243_v26 = vmul.bf16 %v159_v18, %v159_v18  ;;  %v550_v28 = vcombine.low %v158_v14, %v159_v18  ;;  %v652_v31 = vld [vmem:[#allocation8] sm:$0xff]   ;;  %v653_v33 = vld [vmem:[#allocation9] sm:$0xff]   ;;  %v486_v34 = vld [vmem:[#allocation15] sm:$0xff]  ;;  %vm439_vm2 = vcmask 261120   ;;  %s532_s19 = sshll.u32 %s898_s10, 4  ;;  %s533_s19 = int_to_ptr.vmem [resolvable:$true] %s532_s19 }
  0xa4   :  { %599 = vmatprep.subr.bf16.mxu1 %v895_v2  ;;  %647 = vset.pattern.permute.xlu1 %v897_v19  ;;  %v487_v35 = vld [vmem:[#allocation15 + $0x8] sm:$0xff]  ;;  %v654_v36 = vld [vmem:[#allocation9 + $0x8] sm:$0xff]   ;;  %s846_s23 = scalar_lea.vmem %s533_s19, 16  ;;  %s850_s0 = scalar_lea.vmem %s533_s19, 32 }
  0xa5   :  { %588 = vmatpush3.bf16.msra.mxu0 %v548_v13  ;;  %341 = vperm.xlu1 %647, %v327_v21   ;;  %v555_v30 = vcombine.low %v242_v25, %v243_v26  ;;  %v655_v5 = vld [vmem:[#allocation12] sm:$0xff]   ;;  %p847_p11 = scmp.ne.s32.totalorder %s533_s19, %s846_s23  ;;  %p851_p12 = scmp.lt.s32.totalorder %s533_s19, %s533_s19 }
  0xa6   :  { %589 = vmatprep.subr.bf16.mxu0 %v895_v2  ;;  %p852_p13 = scmp.lt.s32.totalorder %s850_s0, %s846_s23 }
  0xa7   :  { %600 = vmatpush3.bf16.msra.mxu1 %v553_v15  ;;  %336 = vperm.xlu0 %646, %v326_v23  }
  0xa8   :  { %601 = vmatprep.subr.bf16.mxu1 %v895_v2  ;;  %p853_p0 = por %p852_p13, %p851_p12 }
  0xa9   :  { %590 = vmatpush3.bf16.msra.mxu0 %v549_v22  ;;  %346 = vperm.xlu1 %647, %v328_v27  }
  0xaa   :  { %591 = vmatprep.subr.bf16.mxu0 %v895_v2  ;;  %p854_p1 = pnand %p853_p0, %p847_p11 }
  0xab   :  { %602 = vmatpush3.bf16.msra.mxu1 %v554_v24  ;;  %426 = vperm.xlu0 %646, %v422_v29   ;;  %v513_v29 = vstv %s563_s7 }
  0xac   :  { %603 = vmatprep.subr.bf16.mxu1 %v895_v2 }
  0xad   :  { %592 = vmatpush3.bf16.msra.mxu0 %v550_v28  ;;  %431 = vperm.xlu1 %647, %v423_v32  }
  0xae   :  { %609 = vmatprep.subr.bf16.mxu0 %v547_v3 }
  0xaf   :  { %604 = vmatpush3.bf16.msra.mxu1 %v555_v30  ;;  %490 = vperm.xlu0 %646, %v486_v34   ;;  %v510_v30 = vld [vmem:[#allocation6] sm:$0x1] }
  0xb0   :  { %594 = vmatmul.mubr.msk.bf16.vlgmr.msra.gmra.mrb[0].mxu0 %vm191_vm1, %v652_v31  ;;  %621 = vmatprep.subr.bf16.mxu1 %v895_v2 }
  0xb1   :  { %610 = vmatpush3.bf16.msra.mxu0 %v547_v3  ;;  %617 = vmatprep.mubr.msk.bf16.mxu0 %vm191_vm1, %v653_v33 }
  0xb2   :  { %606 = vmatmul.mubr.msk.bf16.vlgmr.msra.gmra.mrb[0].mxu1 %vm191_vm1, %v652_v31  ;;  %611 = vmatprep.subr.bf16.mxu0 %v548_v13  ;;  %v511_v31 = vstv %s507_s8 }
  0xb3   :  { %495 = vperm.xlu1 %647, %v487_v35   ;;  %625 = vmatprep.mubr.msk.bf16.mxu1 %vm896_vm0, %v895_v2  ;;  %v512_v35 = vmul.f32 %v511_v31, %v510_v30 }
  0xb5   :  { %612 = vmatpush3.bf16.msra.mxu0 %v548_v13 }
  0xb6   :  { %613 = vmatprep.subr.bf16.mxu0 %v549_v22 }
  0xb9   :  { %614 = vmatpush3.bf16.msra.mxu0 %v549_v22 }
  0xba   :  { %615 = vmatprep.subr.bf16.mxu0 %v550_v28 }
  0xbd   :  { %616 = vmatpush3.bf16.msra.mxu0 %v550_v28 }
  0xc0   :  { %618 = vmatmul.mubr.msk.bf16.vlgmr.msra.gmra.mrb[4].mxu0 %vm191_vm1, %v654_v36 }
 0x122   :  { %v332_v51 = vpop.permute.xlu0 %331 }
 0x124   :  { %v342_v50 = vpop.permute.xlu1 %341 }
 0x126   :  { %v337_v58 = vpop.permute.xlu0 %336 }
 0x128   :  { %v347_v55 = vpop.permute.xlu1 %346 }
 0x12a   :  { %v427_v9 = vpop.permute.xlu0 %426 }
 0x12c   :  { %v432_v10 = vpop.permute.xlu1 %431 }
 0x132   :  { %v496_v21 = vpop.permute.xlu1 %495 }
 0x183   :  { %v229_v37 = vpop.f32.mrb[0].mxu0 }
 0x184   :  { %v309_v38 = vmul.f32 %v229_v37, %v229_v37  ;;  %v595_v39 = vpop.f32.mrb[1].mxu0 }
 0x185   :  { %v232_v40 = vpop.f32.mrb[2].mxu0  ;;  %v302_v41 = vpop.f32.mrb[0].mxu1  ;;  %v517_v39 = vstv %s564_s2 }
 0x186   :  { %v310_v42 = vmul.f32 %v232_v40, %v232_v40  ;;  %v311_v43 = vsub.f32 %v309_v38, %v302_v41  ;;  %v596_v44 = vpop.f32.mrb[3].mxu0  ;;  %v607_v45 = vpop.f32.mrb[1].mxu1 }
 0x187   :  { %v305_v46 = vpop.f32.mrb[2].mxu1 }
 0x188   :  { %v312_v47 = vsub.f32 %v310_v42, %v305_v46  ;;  %v608_v48 = vpop.f32.mrb[3].mxu1 }
 0x18a   :  { %v313_v49 = vadd.f32 %v312_v47, %v311_v43 }
 0x18c   :  { %v314_v6 = vrot.slane %v313_v49, 4 }
 0x18e   :  { %v315_v7 = vadd.f32 %v314_v6, %v313_v49 }
 0x190   :  { %v316_v8 = vrot.slane %v315_v7, 2 }
 0x192   :  { %v317_v12 = vadd.f32 %v316_v8, %v315_v7 }
 0x193   :  { %v619_v52 = vpop.f32.mrb[4].mxu0 }
 0x194   :  { %v408_v53 = vadd.f32 %v619_v52, %v342_v50  ;;  %v399_v54 = vpop.f32.mrb[5].mxu0  ;;  %v318_v19 = vrot.slane %v317_v12, 1 }
 0x195   :  { %v400_v56 = vadd.f32 %v399_v54, %v332_v51  ;;  %v620_v57 = vpop.f32.mrb[6].mxu0 }
 0x196   :  { %v411_v59 = vadd.f32 %v620_v57, %v347_v55  ;;  %v402_v60 = vpop.f32.mrb[7].mxu0  ;;  %v416_v62 = vmax.f32 %v408_v53, 0.0  ;;  %v319_v24 = vadd.f32 %v318_v19, %v317_v12 }
 0x197   :  { %v403_v61 = vadd.f32 %v402_v60, %v337_v58  ;;  %v414_v0 = vmax.f32 %v400_v56, 0.0 }
 0x198   :  { %v417_v63 = vmax.f32 %v411_v59, 0.0  ;;  %v320_v27 = vmul.f32 0.5, %v319_v24 }
 0x199   :  { %v415_v1 = vmax.f32 %v403_v61, 0.0 }
 0x19a   :  { %v419_v3 = vpack.c.bf16 %v417_v63, %v416_v62  ;;  %v514_v33 = vmul.f32 %v513_v29, %v320_v27 }
 0x19b   :  { %v418_v4 = vpack.c.bf16 %v415_v1, %v414_v0 }
 0x19c   :  { %v515_v38 = vadd.f32 %v514_v33, %v512_v35 }
 0x19d   :  { %622 = vmatpush3.bf16.msra.mxu1 %v418_v4 }
 0x19e   :  { %623 = vmatprep.subr.bf16.mxu1 %v895_v2  ;;  %v491_v2 = vpop.permute.xlu0 %490 }
 0x1a1   :  { %624 = vmatpush3.bf16.msra.mxu1 %v419_v3 }
 0x1a4   :  { %626 = vmatmul.mubr.msk.bf16.vlgmr.msra.gmra.mrb[4].mxu1 %vm439_vm2, %v655_v5 }
 0x277   :  { %v477_v11 = vpop.f32.mrb[4].mxu1 }
 0x278   :  { %v478_v13 = vadd.f32 %v477_v11, %v427_v9  ;;  %v627_v14 = vpop.f32.mrb[5].mxu1 }
 0x279   :  { %v480_v15 = vpop.f32.mrb[6].mxu1 }
 0x27a   :  { %v484_v16 = vmax.f32 %v478_v13, 0.0  ;;  %v481_v17 = vadd.f32 %v480_v15, %v432_v10  ;;  %v628_v18 = vpop.f32.mrb[7].mxu1 }
 0x27c   :  { %v485_v20 = vmax.f32 %v481_v17, 0.0  ;;  %v498_v22 = vmul.f32 %v491_v2, %v484_v16 }
 0x27e   :  { %v499_v23 = vmul.f32 %v496_v21, %v485_v20 }
 0x280   :  { %v500_v25 = vadd.f32 %v499_v23, %v498_v22 }
 0x282   :  { %v501_v26 = vrot.slane %v500_v25, 4 }
 0x284   :  { %v502_v28 = vadd.f32 %v501_v26, %v500_v25 }
 0x286   :  { %v503_v32 = vrot.slane %v502_v28, 2 }
 0x288   :  { %v504_v34 = vadd.f32 %v503_v32, %v502_v28 }
 0x28a   :  { %v505_v36 = vrot.slane %v504_v34, 1 }
 0x28c   :  { %v506_v37 = vadd.f32 %v505_v36, %v504_v34 }
 0x28e   :  { %v516_v40 = vadd.f32 %v515_v38, %v506_v37 }
 0x290   :  { %v518_v41 = vadd.f32 %v517_v39, %v516_v40 }
 0x292   :  { %v565_v42 = vmul.f32 -1.442695, %v518_v41 }
 0x294   :  { %656 = vpow2.f32 %v565_v42 }
 0x29e   :  { %v657_v43 = vpop.eup %656 }
 0x29f   :  { %v522_v44 = vadd.f32 1.0, %v657_v43 }
 0x2a1   :  { %658 = vrcp.f32 %v522_v44 }
 0x2ab   :  { %v659_v45 = vpop.eup %658 }
 0x2ac   :  { %525 = vst [vmem:[#allocation18] sm:$0x1] %v659_v45 }
 0x2ad   :  { %857 = shalt.err (!%p854_p1)
}
 0x2ae   :  { %s858_s27 = scalar_lea.hbm %s1126_s9, 16 }
 0x2af   :  { %p859_p2 = scmp.ne.s32.totalorder %s1126_s9, %s858_s27  ;;  %p862_p3 = scmp.lt.u32.totalorder %s858_s27, %s1126_s9 }
 0x2b1   :  { %p864_p4 = pnand %p862_p3, %p859_p2 }
 0x2b3   :  { %867 = shalt.err (!%p864_p4)
}
 0x2b4   :  { %535 = dma.vmem_to_hbm [thread:$0]  %s533_s19, 16, %s1126_s9, [#allocation4]  }
 0x2b5   :  { %880 = dma.done.wait [#allocation4], 16  }
 0x2b6   :  { %881 = vsyncadd [#allocation4], 4294967280 }
 0x2b7   :  { %539 = vsyncpa [#allocation3], 1 }
 0x2b8   :  { %540 = vsyncpa [#allocation7], 1 }
 0x2b9   :  { %541 = vsyncpa [#allocation10], 1 }
 0x2ba   :  { %542 = vsyncpa [#allocation13], 1 }
 0x2bb   :  { %543 = vsyncpa [#allocation16], 1 }
 0x2bc   :  { %544 = vsyncpa [#allocation4], 1 }
 0x2bd   :  { %545 = vsyncpa [#allocation5], 1 }

</bundles_post_ra>
